<compile_context>
chip_gen: v7x
topology: tpu7x:2x2x1
jax: 0.10.0
libtpu: 0.0.40
codegen_flags: <defaults>
</compile_context>

<pallas_src>
import functools

import jax
import jax.numpy as jnp
from jax import lax
from jax.experimental import pallas as pl
from jax.experimental.pallas import tpu as pltpu

# ----------------------------------------------------------------------------
# Hyper-parameters chosen to be shape-consistent with the (1, 8, 32) inputs
# of the original script.
# ----------------------------------------------------------------------------
NUM_HEADS = 1
QUERY_SIZE = 32
KEY_SIZE = 32
VALUE_SIZE = 32
INPUT_SIZE = 32

DROPOUT_P = 0.75
KEEP_PROB = 1.0 - DROPOUT_P
SCALE_FACTOR = 1.0 / (QUERY_SIZE ** 0.5)


def _attention_kernel(B, S,
                      # inputs (flattened (B*S, D) activations + prepped weights)
                      x1_ref, x2_ref, x3_ref,
                      wq_ref, bq_ref, wk_ref, bk_ref,
                      wvo_ref, bvo_ref, bo_ref, mask_ref,
                      # output
                      out_ref):
    # ---- Q / K projections on the flattened slab (one MXU matmul each) -----
    # The 1/sqrt(d) scale is pre-folded into wq/bq in the wrapper.
    q = jnp.dot(x1_ref[...], wq_ref[...],
                preferred_element_type=jnp.float32) + bq_ref[...]
    k = jnp.dot(x2_ref[...], wk_ref[...],
                preferred_element_type=jnp.float32) + bk_ref[...]
    # ---- fused value + output projection (Wvo = Wv^T @ Wo^T) ---------------
    v = jnp.dot(x3_ref[...], wvo_ref[...],
                preferred_element_type=jnp.float32) + bvo_ref[...]

    # Per-batch attention.  B is a static Python constant (tiny), so this is a
    # fully unrolled trace-time loop over static row slices.
    for b in range(B):
        rows = slice(b * S, (b + 1) * S)
        qb, kb, vb = q[rows], k[rows], v[rows]

        # scores: contract the last dim of both operands directly — no k.T,
        # so no XLU transpose / vreg round-trip.
        s = lax.dot_general(qb, kb, (((1,), (1,)), ((), ())),
                            preferred_element_type=jnp.float32)

        # softmax: exp on the EUP, denominator via approx reciprocal (EUP slot,
        # keeps the VALU free of the exact Newton iteration).
        m = jnp.max(s, axis=-1, keepdims=True)
        e = jnp.exp(s - m)
        p = e * pl.reciprocal(jnp.sum(e, axis=-1, keepdims=True), approx=True)

        # dropout: mask was pre-scaled by 1/keep_prob outside the kernel.
        p = p * mask_ref[b]

        # attention-weighted (already output-projected) values + output bias.
        ob = jnp.dot(p, vb, preferred_element_type=jnp.float32) + bo_ref[...]
        out_ref[b] = ob.astype(out_ref.dtype)


def attention_forward(x1, x2, x3, params, dropout_key):
    """x1/x2/x3: (B, S, D) float32. Returns ((B, S, INPUT_SIZE) f32, mask)."""
    B, S, D = x1.shape
    wq, bq, wk, bk, wv, bv, wo, bo = params

    # ---- one-time weight prep (outside the kernel) --------------------------
    wq_t = wq.T * SCALE_FACTOR                 # fold qk scale into Wq
    bq_s = (bq * SCALE_FACTOR).reshape(1, -1)
    wk_t = wk.T
    bk_2 = bk.reshape(1, -1)
    wvo_t = wv.T @ wo.T                        # fuse value + output projections
    bvo_2 = (bv @ wo.T).reshape(1, -1)
    bo_2 = bo.reshape(1, -1)

    # ---- dropout mask, pre-scaled by 1/keep_prob ----------------------------
    # Generated with jax.random (portable: no TPU-only PRNG primitives).
    if KEEP_PROB >= 1.0:
        mask = jnp.ones((B, S, S), jnp.float32)
    elif KEEP_PROB <= 0.0:
        mask = jnp.zeros((B, S, S), jnp.float32)
    else:
        keep = jax.random.bernoulli(dropout_key, p=KEEP_PROB, shape=(B, S, S))
        mask = keep.astype(jnp.float32) * (1.0 / KEEP_PROB)

    # Flatten (B, S) so the three projections are single dots on a (B*S, D) slab.
    x1f = x1.reshape(B * S, D)
    x2f = x2.reshape(B * S, D)
    x3f = x3.reshape(B * S, D)

    kernel = functools.partial(_attention_kernel, B, S)
    vmem = pl.BlockSpec(memory_space=pltpu.MemorySpace.VMEM)

    # Single invocation (no grid): the whole working set is a few KiB, far
    # below VMEM on any TPU generation, so a batch grid would be pure per-step
    # pipeline overhead.
    return pl.pallas_call(
        kernel,
        out_shape=jax.ShapeDtypeStruct((B, S, INPUT_SIZE), jnp.float32),
        in_specs=[vmem] * 11,
        out_specs=vmem,
    )(x1f, x2f, x3f, wq_t, bq_s, wk_t, bk_2, wvo_t, bvo_2, bo_2, mask), mask


def reference_forward(x1, x2, x3, params, mask):
    """Pure-JAX reference (same math as the PyTorch module, same mask)."""
    wq, bq, wk, bk, wv, bv, wo, bo = params
    q = x1 @ wq.T + bq
    k = x2 @ wk.T + bk
    v = x3 @ wv.T + bv
    s = jnp.einsum("bqd,bkd->bqk", q, k) * SCALE_FACTOR
    p = jax.nn.softmax(s, axis=-1) * mask
    return jnp.einsum("bqk,bkd->bqd", p, v) @ wo.T + bo


def init_params(key):
    """Deterministic torch.nn.Linear-style init: U(-1/sqrt(fan_in), +)."""
    def linear(key, fan_in, fan_out):
        k_w, k_b = jax.random.split(key)
        bound = 1.0 / (fan_in ** 0.5)
        w = jax.random.uniform(k_w, (fan_out, fan_in), jnp.float32,
                               -bound, bound)
        b = jax.random.uniform(k_b, (fan_out,), jnp.float32, -bound, bound)
        return w, b

    k1, k2, k3, k4 = jax.random.split(key, 4)
    wq, bq = linear(k1, QUERY_SIZE, NUM_HEADS * KEY_SIZE)
    wk, bk = linear(k2, KEY_SIZE, NUM_HEADS * KEY_SIZE)
    wv, bv = linear(k3, VALUE_SIZE, NUM_HEADS * VALUE_SIZE)
    wo, bo = linear(k4, NUM_HEADS * VALUE_SIZE, INPUT_SIZE)
    return (wq, bq, wk, bk, wv, bv, wo, bo)


if __name__ == "__main__":
    key = jax.random.PRNGKey(0)
    k_params, k1, k2, k3, k_drop = jax.random.split(key, 5)

    params = init_params(k_params)

    # Inputs consistent with the original script: (1, 8, 32)
    x1 = jax.random.normal(k1, (1, 8, 32), jnp.float32)
    x2 = jax.random.normal(k2, (1, 8, 32), jnp.float32)
    x3 = jax.random.normal(k3, (1, 8, 32), jnp.float32)

    out, mask = attention_forward(x1, x2, x3, params, k_drop)
    jax.block_until_ready(out)

    assert out.shape == (1, 8, INPUT_SIZE), out.shape

    # Sanity check against the pure-JAX reference (loose tolerance because of
    # the approximate EUP reciprocal in the softmax denominator).
    ref = reference_forward(x1, x2, x3, params, mask)
    err = float(jnp.max(jnp.abs(out - ref)))
    assert jnp.allclose(out, ref, rtol=5e-2, atol=5e-2), err

    print("KERNEL_OK")
</pallas_src>

<mosaic_0001>
module attributes {stable_mosaic.version = 11 : i64} {
  func.func @_attention_kernel(%arg0: memref<8x32xf32, #tpu.memory_space<vmem>>, %arg1: memref<8x32xf32, #tpu.memory_space<vmem>>, %arg2: memref<8x32xf32, #tpu.memory_space<vmem>>, %arg3: memref<32x32xf32, #tpu.memory_space<vmem>>, %arg4: memref<1x32xf32, #tpu.memory_space<vmem>>, %arg5: memref<32x32xf32, #tpu.memory_space<vmem>>, %arg6: memref<1x32xf32, #tpu.memory_space<vmem>>, %arg7: memref<32x32xf32, #tpu.memory_space<vmem>>, %arg8: memref<1x32xf32, #tpu.memory_space<vmem>>, %arg9: memref<1x32xf32, #tpu.memory_space<vmem>>, %arg10: memref<1x8x8xf32, #tpu.memory_space<vmem>>, %arg11: memref<1x8x32xf32, #tpu.memory_space<vmem>>) attributes {dimension_semantics = [], scalar_prefetch = 0 : i64, scratch_operands = 0 : i64, tpu.core_type = #tpu.core_type<tc>} {
    %c0 = arith.constant 0 : index
    %c0_0 = arith.constant 0 : index
    %0 = vector.load %arg0[%c0, %c0_0] : memref<8x32xf32, #tpu.memory_space<vmem>>, vector<8x32xf32>
    %c0_1 = arith.constant 0 : index
    %c0_2 = arith.constant 0 : index
    %1 = vector.load %arg3[%c0_1, %c0_2] : memref<32x32xf32, #tpu.memory_space<vmem>>, vector<32x32xf32>
    %cst = arith.constant dense<0.000000e+00> : vector<8x32xf32>
    %2 = tpu.matmul %0, %1, %cst {dimension_numbers = #tpu.dot_dimension_numbers<[1], [0], [0], [1], [0, 0, 1, 1], [], []>} : vector<8x32xf32>, vector<32x32xf32>, vector<8x32xf32> -> vector<8x32xf32>
    %c0_3 = arith.constant 0 : index
    %c0_4 = arith.constant 0 : index
    %3 = vector.load %arg4[%c0_3, %c0_4] : memref<1x32xf32, #tpu.memory_space<vmem>>, vector<1x32xf32>
    %4 = vector.broadcast %3 : vector<1x32xf32> to vector<8x32xf32>
    %5 = arith.addf %2, %4 : vector<8x32xf32>
    %c0_5 = arith.constant 0 : index
    %c0_6 = arith.constant 0 : index
    %6 = vector.load %arg1[%c0_5, %c0_6] : memref<8x32xf32, #tpu.memory_space<vmem>>, vector<8x32xf32>
    %c0_7 = arith.constant 0 : index
    %c0_8 = arith.constant 0 : index
    %7 = vector.load %arg5[%c0_7, %c0_8] : memref<32x32xf32, #tpu.memory_space<vmem>>, vector<32x32xf32>
    %cst_9 = arith.constant dense<0.000000e+00> : vector<8x32xf32>
    %8 = tpu.matmul %6, %7, %cst_9 {dimension_numbers = #tpu.dot_dimension_numbers<[1], [0], [0], [1], [0, 0, 1, 1], [], []>} : vector<8x32xf32>, vector<32x32xf32>, vector<8x32xf32> -> vector<8x32xf32>
    %c0_10 = arith.constant 0 : index
    %c0_11 = arith.constant 0 : index
    %9 = vector.load %arg6[%c0_10, %c0_11] : memref<1x32xf32, #tpu.memory_space<vmem>>, vector<1x32xf32>
    %10 = vector.broadcast %9 : vector<1x32xf32> to vector<8x32xf32>
    %11 = arith.addf %8, %10 : vector<8x32xf32>
    %c0_12 = arith.constant 0 : index
    %c0_13 = arith.constant 0 : index
    %12 = vector.load %arg2[%c0_12, %c0_13] : memref<8x32xf32, #tpu.memory_space<vmem>>, vector<8x32xf32>
    %c0_14 = arith.constant 0 : index
    %c0_15 = arith.constant 0 : index
    %13 = vector.load %arg7[%c0_14, %c0_15] : memref<32x32xf32, #tpu.memory_space<vmem>>, vector<32x32xf32>
    %cst_16 = arith.constant dense<0.000000e+00> : vector<8x32xf32>
    %14 = tpu.matmul %12, %13, %cst_16 {dimension_numbers = #tpu.dot_dimension_numbers<[1], [0], [0], [1], [0, 0, 1, 1], [], []>} : vector<8x32xf32>, vector<32x32xf32>, vector<8x32xf32> -> vector<8x32xf32>
    %c0_17 = arith.constant 0 : index
    %c0_18 = arith.constant 0 : index
    %15 = vector.load %arg8[%c0_17, %c0_18] : memref<1x32xf32, #tpu.memory_space<vmem>>, vector<1x32xf32>
    %16 = vector.broadcast %15 : vector<1x32xf32> to vector<8x32xf32>
    %17 = arith.addf %14, %16 : vector<8x32xf32>
    %cst_19 = arith.constant dense<0.000000e+00> : vector<8x8xf32>
    %18 = tpu.matmul %5, %11, %cst_19 {dimension_numbers = #tpu.dot_dimension_numbers<[1], [1], [0], [0], [0, 0, 1, 0], [], []>} : vector<8x32xf32>, vector<8x32xf32>, vector<8x8xf32> -> vector<8x8xf32>
    %cst_20 = arith.constant dense<0xFF800000> : vector<8xf32>
    %19 = vector.multi_reduction <maximumf>, %18, %cst_20 [1] : vector<8x8xf32> to vector<8xf32>
    %20 = vector.shape_cast %19 : vector<8xf32> to vector<8x1xf32>
    %21 = vector.broadcast %20 : vector<8x1xf32> to vector<8x8xf32>
    %22 = arith.subf %18, %21 : vector<8x8xf32>
    %23 = math.exp %22 : vector<8x8xf32>
    %cst_21 = arith.constant dense<0.000000e+00> : vector<8xf32>
    %24 = vector.multi_reduction <add>, %23, %cst_21 [1] : vector<8x8xf32> to vector<8xf32>
    %25 = vector.shape_cast %24 : vector<8xf32> to vector<8x1xf32>
    %26 = tpu.reciprocal %25 {approx = true} : vector<8x1xf32> -> vector<8x1xf32>
    %27 = vector.broadcast %26 : vector<8x1xf32> to vector<8x8xf32>
    %28 = arith.mulf %23, %27 : vector<8x8xf32>
    %c0_22 = arith.constant 0 : index
    %c0_23 = arith.constant 0 : index
    %c0_24 = arith.constant 0 : index
    %29 = vector.load %arg10[%c0_22, %c0_23, %c0_24] : memref<1x8x8xf32, #tpu.memory_space<vmem>>, vector<1x8x8xf32>
    %30 = vector.shape_cast %29 : vector<1x8x8xf32> to vector<8x8xf32>
    %31 = arith.mulf %28, %30 : vector<8x8xf32>
    %cst_25 = arith.constant dense<0.000000e+00> : vector<8x32xf32>
    %32 = tpu.matmul %31, %17, %cst_25 {dimension_numbers = #tpu.dot_dimension_numbers<[1], [0], [0], [1], [0, 0, 1, 1], [], []>} : vector<8x8xf32>, vector<8x32xf32>, vector<8x32xf32> -> vector<8x32xf32>
    %c0_26 = arith.constant 0 : index
    %c0_27 = arith.constant 0 : index
    %33 = vector.load %arg9[%c0_26, %c0_27] : memref<1x32xf32, #tpu.memory_space<vmem>>, vector<1x32xf32>
    %34 = vector.broadcast %33 : vector<1x32xf32> to vector<8x32xf32>
    %35 = arith.addf %32, %34 : vector<8x32xf32>
    %c0_28 = arith.constant 0 : index
    %c0_29 = arith.constant 0 : index
    %c0_30 = arith.constant 0 : index
    %36 = vector.load %arg11[%c0_28, %c0_29, %c0_30] : memref<1x8x32xf32, #tpu.memory_space<vmem>>, vector<1x8x32xf32>
    %37 = vector.shape_cast %36 : vector<1x8x32xf32> to vector<8x32xf32>
    %38 = vector.shape_cast %35 : vector<8x32xf32> to vector<1x8x32xf32>
    tpu.vector_store %arg11[%c0_28, %c0_29, %c0_30], %38 {strides = array<i32>} : memref<1x8x32xf32, #tpu.memory_space<vmem>>, vector<1x8x32xf32>,
    return
  }
}

</mosaic_0001>

<bundles_post_ra>
// kernel: tpu_custom_call.1
= control target key start
LH: loop header
LB: loop body
LE: loop exit
PB: predicated region body
PF: predicated region fallthrough
CT: control target
= control target key end

     0   :  { %16 = vsyncpa [#allocation3], 0  ;;  %s1038_s0 = inlined_call_operand.hbm [shape: f32[8,32], index: 0, kind: input, shape index: {}]   ;;  %s1039_s1 = inlined_call_operand.hbm [shape: f32[8,32], index: 1, kind: input, shape index: {}]   ;;  %s1040_s2 = inlined_call_operand.hbm [shape: f32[8,32], index: 2, kind: input, shape index: {}]   ;;  %s1041_s3 = inlined_call_operand.hbm [shape: f32[32,32], index: 3, kind: input, shape index: {}]   ;;  %s1042_s4 = inlined_call_operand.vmem [shape: f32[1,32], index: 4, kind: input, shape index: {}]   ;;  %s1043_s5 = inlined_call_operand.hbm [shape: f32[32,32], index: 5, kind: input, shape index: {}]   ;;  %s1044_s6 = inlined_call_operand.vmem [shape: f32[1,32], index: 6, kind: input, shape index: {}]   ;;  %s1045_s7 = inlined_call_operand.hbm [shape: f32[32,32], index: 7, kind: input, shape index: {}]   ;;  %s1046_s8 = inlined_call_operand.vmem [shape: f32[1,32], index: 8, kind: input, shape index: {}]   ;;  %s1047_s9 = inlined_call_operand.vmem [shape: f32[1,32], index: 9, kind: input, shape index: {}]   ;;  %s1048_s10 = inlined_call_operand.vmem [shape: f32[1,8,8], index: 10, kind: input, shape index: {}]   ;;  %s1049_s11 = inlined_call_operand.hbm [shape: f32[1,8,32], index: 11, kind: output, shape index: {}]  }
   0x1   :  { %17 = vsyncpa [#allocation6], 0 }
   0x2   :  { %18 = vsyncpa [#allocation9], 0 }
   0x3   :  { %19 = vsyncpa [#allocation12], 0 }
   0x4   :  { %20 = vsyncpa [#allocation4], 0  ;;  %s830_s17 = smov [#allocation5]   ;;  %s831_s19 = smov [#allocation8]  }
   0x5   :  { %s37_s18 = sshll.u32 %s830_s17, 4  ;;  %s56_s20 = sshll.u32 %s831_s19, 4  ;;  %s38_s18 = int_to_ptr.vmem [resolvable:$true] %s37_s18  ;;  %s902_s20 = int_to_ptr.vmem [resolvable:$true] %s56_s20 }
   0x6   :  { %s666_s23 = scalar_lea.hbm %s1039_s1, 128 }
   0x7   :  { %p667_p0 = scmp.ne.s32.totalorder %s1039_s1, %s666_s23  ;;  %p670_p1 = scmp.lt.u32.totalorder %s666_s23, %s1039_s1 }
   0x9   :  { %p672_p2 = pnand %p670_p1, %p667_p0 }
   0xb   :  { %675 = shalt.err (!%p672_p2)
}
   0xc   :  { %s676_s28 = scalar_lea.vmem %s38_s18, 128  ;;  %p681_p4 = scmp.lt.s32.totalorder %s38_s18, %s38_s18 }
   0xd   :  { %p677_p3 = scmp.ne.s32.totalorder %s38_s18, %s676_s28  ;;  %p682_p5 = scmp.lt.s32.totalorder %s676_s28, %s676_s28 }
   0xf   :  { %p683_p6 = por %p682_p5, %p681_p4 }
  0x11   :  { %p684_p7 = pnand %p683_p6, %p677_p3 }
  0x13   :  { %687 = shalt.err (!%p684_p7)
}
  0x14   :  { %40 = dma.hbm_to_vmem [thread:$0]  %s1039_s1, 128, %s38_s18, [#allocation6]  }
  0x15   :  { %s688_s14 = scalar_lea.hbm %s1041_s3, 512 }
  0x16   :  { %p689_p8 = scmp.ne.s32.totalorder %s1041_s3, %s688_s14  ;;  %p692_p9 = scmp.lt.u32.totalorder %s688_s14, %s1041_s3 }
  0x18   :  { %p694_p10 = pnand %p692_p9, %p689_p8 }
  0x1a   :  { %697 = shalt.err (!%p694_p10)
}
  0x1b   :  { %s698_s21 = scalar_lea.vmem %s902_s20, 512  ;;  %p703_p12 = scmp.lt.s32.totalorder %s902_s20, %s902_s20 }
  0x1c   :  { %p699_p11 = scmp.ne.s32.totalorder %s902_s20, %s698_s21  ;;  %p704_p13 = scmp.lt.s32.totalorder %s698_s21, %s698_s21 }
  0x1e   :  { %p705_p0 = por %p704_p13, %p703_p12 }
  0x20   :  { %p706_p1 = pnand %p705_p0, %p699_p11 }
  0x22   :  { %709 = shalt.err (!%p706_p1)
}
  0x23   :  { %s832_s1 = smov 128   ;;  %s833_s18 = smov 8  }
  0x24   :  { %62 = dma.hbm_to_vmem [thread:$0]  %s1041_s3, 512, %s902_s20, [#allocation9], %s832_s1, %s832_s1, %s833_s18  }
  0x25   :  { %s834_s24 = smov [#allocation2]   ;;  %s835_s26 = smov [#allocation7]  }
  0x26   :  { %s27_s25 = sshll.u32 %s834_s24, 4  ;;  %s47_s27 = sshll.u32 %s835_s26, 4  ;;  %s28_s25 = int_to_ptr.vmem [resolvable:$true] %s27_s25  ;;  %s48_s27 = int_to_ptr.vmem [resolvable:$true] %s47_s27 }
  0x27   :  { %s710_s30 = scalar_lea.hbm %s1038_s0, 128 }
  0x28   :  { %p711_p2 = scmp.ne.s32.totalorder %s1038_s0, %s710_s30  ;;  %p714_p3 = scmp.lt.u32.totalorder %s710_s30, %s1038_s0 }
  0x2a   :  { %p716_p4 = pnand %p714_p3, %p711_p2 }
  0x2c   :  { %719 = shalt.err (!%p716_p4)
}
  0x2d   :  { %s720_s3 = scalar_lea.vmem %s28_s25, 128  ;;  %p725_p6 = scmp.lt.s32.totalorder %s28_s25, %s28_s25 }
  0x2e   :  { %p721_p5 = scmp.ne.s32.totalorder %s28_s25, %s720_s3  ;;  %p726_p7 = scmp.lt.s32.totalorder %s720_s3, %s720_s3 }
  0x30   :  { %p727_p8 = por %p726_p7, %p725_p6 }
  0x32   :  { %p728_p9 = pnand %p727_p8, %p721_p5 }
  0x34   :  { %731 = shalt.err (!%p728_p9)
}
  0x35   :  { %30 = dma.hbm_to_vmem [thread:$0]  %s1038_s0, 128, %s28_s25, [#allocation3]  }
  0x36   :  { %s732_s21 = scalar_lea.hbm %s1040_s2, 128 }
  0x37   :  { %p733_p10 = scmp.ne.s32.totalorder %s1040_s2, %s732_s21  ;;  %p736_p11 = scmp.lt.u32.totalorder %s732_s21, %s1040_s2 }
  0x39   :  { %p738_p12 = pnand %p736_p11, %p733_p10 }
  0x3b   :  { %741 = shalt.err (!%p738_p12)
}
  0x3c   :  { %s742_s28 = scalar_lea.vmem %s48_s27, 128  ;;  %p747_p0 = scmp.lt.s32.totalorder %s48_s27, %s48_s27 }
  0x3d   :  { %p743_p13 = scmp.ne.s32.totalorder %s48_s27, %s742_s28  ;;  %p748_p1 = scmp.lt.s32.totalorder %s742_s28, %s742_s28 }
  0x3f   :  { %p749_p2 = por %p748_p1, %p747_p0 }
  0x41   :  { %p750_p3 = pnand %p749_p2, %p743_p13 }
  0x43   :  { %753 = shalt.err (!%p750_p3)
}
  0x44   :  { %50 = dma.hbm_to_vmem [thread:$0]  %s1040_s2, 128, %s48_s27, [#allocation6]  }
  0x45   :  { %s836_s29 = smov [#allocation10]   ;;  %s837_s12 = smov [#allocation11]  }
  0x46   :  { %s70_s30 = sshll.u32 %s836_s29, 4  ;;  %s84_s13 = sshll.u32 %s837_s12, 4  ;;  %s71_s30 = int_to_ptr.vmem [resolvable:$true] %s70_s30  ;;  %s960_s13 = int_to_ptr.vmem [resolvable:$true] %s84_s13 }
  0x47   :  { %s754_s3 = scalar_lea.hbm %s1043_s5, 512 }
  0x48   :  { %p755_p4 = scmp.ne.s32.totalorder %s1043_s5, %s754_s3  ;;  %p758_p5 = scmp.lt.u32.totalorder %s754_s3, %s1043_s5 }
  0x4a   :  { %p760_p6 = pnand %p758_p5, %p755_p4 }
  0x4c   :  { %763 = shalt.err (!%p760_p6)
}
  0x4d   :  { %s764_s2 = scalar_lea.vmem %s71_s30, 512  ;;  %p769_p8 = scmp.lt.s32.totalorder %s71_s30, %s71_s30 }
  0x4e   :  { %p765_p7 = scmp.ne.s32.totalorder %s71_s30, %s764_s2  ;;  %p770_p9 = scmp.lt.s32.totalorder %s764_s2, %s764_s2 }
  0x50   :  { %p771_p10 = por %p770_p9, %p769_p8 }
  0x52   :  { %p772_p11 = pnand %p771_p10, %p765_p7 }
  0x54   :  { %775 = shalt.err (!%p772_p11)
}
  0x55   :  { %76 = dma.hbm_to_vmem [thread:$0]  %s1043_s5, 512, %s71_s30, [#allocation9], %s832_s1, %s832_s1, %s833_s18  }
  0x56   :  { %s776_s24 = scalar_lea.hbm %s1045_s7, 512 }
  0x57   :  { %p777_p12 = scmp.ne.s32.totalorder %s1045_s7, %s776_s24  ;;  %p780_p13 = scmp.lt.u32.totalorder %s776_s24, %s1045_s7 }
  0x59   :  { %p782_p0 = pnand %p780_p13, %p777_p12 }
  0x5b   :  { %785 = shalt.err (!%p782_p0)
}
  0x5c   :  { %s786_s29 = scalar_lea.vmem %s960_s13, 512  ;;  %p791_p2 = scmp.lt.s32.totalorder %s960_s13, %s960_s13 }
  0x5d   :  { %p787_p1 = scmp.ne.s32.totalorder %s960_s13, %s786_s29  ;;  %p792_p3 = scmp.lt.s32.totalorder %s786_s29, %s786_s29 }
  0x5f   :  { %p793_p4 = por %p792_p3, %p791_p2 }
  0x61   :  { %p794_p5 = pnand %p793_p4, %p787_p1 }
  0x63   :  { %797 = shalt.err (!%p794_p5)
}
  0x64   :  { %90 = dma.hbm_to_vmem [thread:$0]  %s1045_s7, 512, %s960_s13, [#allocation12], %s832_s1, %s832_s1, %s833_s18  }
  0x65   :  { %820 = dma.done.wait [#allocation3], 128  }
  0x66   :  { %821 = vsyncadd [#allocation3], 4294967168 }
  0x67   :  { %822 = dma.done.wait [#allocation6], 256  }
  0x68   :  { %823 = vsyncadd [#allocation6], 4294967040 }
  0x69   :  { %824 = dma.done.wait [#allocation9], 1024  }
  0x6a   :  { %825 = vsyncadd [#allocation9], 4294966272 }
  0x6b   :  { %826 = dma.done.wait [#allocation12], 512  }
  0x6c   :  { %827 = vsyncadd [#allocation12], 4294966784  ;;  %v838_v0 = vmov 0.0|0.0   ;;  %vm839_vm0 = vmmov 0   ;;  %v840_v1 = vmov 0.0   ;;  %v202_v2 = vld [vmem:[#allocation10] sm:$0xff] }
  0x6d   :  { %638 = vmatprep.subr.bf16.mxu1 %v838_v0  ;;  %632 = vmatprep.subr.bf16.mxu0 %v838_v0  ;;  %v203_v3 = vld [vmem:[#allocation10 + $0x8] sm:$0xff]  ;;  %v116_v4 = vld [vmem:[#allocation8] sm:$0xff]  ;;  %v204_v7 = vld [vmem:[#allocation10 + $0x10] sm:$0xff]  ;;  %vm127_vm1 = vcmask 261120   ;;  %vm447_vm2 = vcmask 64512   ;;  %s841_s20 = smov [#allocation13]  }
  0x6e   :  { %608 = vmatprep.mubr.msk.f32.mxu1 %vm839_vm0, %v840_v1  ;;  %597 = vmatprep.mubr.msk.f32.mxu0 %vm839_vm0, %v840_v1  ;;  %v639_v5 = vpack.c.bf16 %v203_v3, %v202_v2  ;;  %v117_v6 = vld [vmem:[#allocation8 + $0x8] sm:$0xff]  ;;  %v205_v8 = vld [vmem:[#allocation10 + $0x18] sm:$0xff]  ;;  %v118_v10 = vld [vmem:[#allocation8 + $0x10] sm:$0xff] }
  0x6f   :  { %v633_v9 = vpack.c.bf16 %v117_v6, %v116_v4  ;;  %v119_v11 = vld [vmem:[#allocation8 + $0x18] sm:$0xff]  ;;  %v642_v12 = vpack.c.bf16 %v205_v8, %v204_v7  ;;  %v201_v14 = vld [vmem:[#allocation5] sm:$0xff]  ;;  %v115_v15 = vld [vmem:[#allocation2] sm:$0xff] }
  0x70   :  { %640 = vmatpush3.bf16.msra.mxu1 %v639_v5  ;;  %v636_v13 = vpack.c.bf16 %v119_v11, %v118_v10  ;;  %v562_v16 = vld [vmem:[%s1044_s6] ss:$0 sm:$0xff]  ;;  %v287_v24 = vld [vmem:[#allocation11] sm:$0xff]  ;;  %v289_v26 = vld [vmem:[#allocation11 + $0x10] sm:$0xff] }
  0x71   :  { %634 = vmatpush3.bf16.msra.mxu0 %v633_v9  ;;  %641 = vmatprep.subr.bf16.mxu1 %v838_v0  ;;  %v560_v17 = vld [vmem:[%s1042_s4] ss:$0 sm:$0xff]  ;;  %v290_v28 = vld [vmem:[#allocation11 + $0x18] sm:$0xff] }
  0x72   :  { %635 = vmatprep.subr.bf16.mxu0 %v838_v0  ;;  %v288_v25 = vld [vmem:[#allocation11 + $0x8] sm:$0xff]  ;;  %v648_v29 = vpack.c.bf16 %v290_v28, %v289_v26  ;;  %v286_v30 = vld [vmem:[#allocation7] sm:$0xff] }
  0x73   :  { %v645_v27 = vpack.c.bf16 %v288_v25, %v287_v24  ;;  %v564_v40 = vld [vmem:[%s1046_s8] ss:$0 sm:$0xff]  ;;  %s548_s8 = sshll.u32 %s841_s20, 4  ;;  %s549_s8 = int_to_ptr.vmem [resolvable:$true] %s548_s8 }
  0x74   :  { %643 = vmatpush3.bf16.msra.mxu1 %v642_v12  ;;  %v459_v45 = vld [vmem:[%s1048_s10] sm:$0xff]  ;;  %s798_s16 = scalar_lea.vmem %s549_s8, 128  ;;  %p803_p7 = scmp.lt.s32.totalorder %s549_s8, %s549_s8 }
  0x75   :  { %637 = vmatpush3.bf16.msra.mxu0 %v636_v13  ;;  %622 = vmatprep.subr.mxu1 %v840_v1  ;;  %v568_v48 = vld [vmem:[%s1047_s9] ss:$0 sm:$0xff]  ;;  %p799_p6 = scmp.ne.s32.totalorder %s549_s8, %s798_s16  ;;  %p804_p8 = scmp.lt.s32.totalorder %s798_s16, %s798_s16 }
  0x76   :  { %644 = vmatprep.subr.bf16.mxu0 %v838_v0 }
  0x77   :  { %609 = vmatmul.mubr.msk.f32.vlgmr.msra.gmra.mrb[0].mxu1 %vm127_vm1, %v201_v14  ;;  %p805_p9 = por %p804_p8, %p803_p7 }
  0x78   :  { %598 = vmatmul.mubr.msk.f32.vlgmr.msra.gmra.mrb[0].mxu0 %vm127_vm1, %v115_v15  ;;  %624 = vmatprep.mubr.msk.f32.mxu1 %vm839_vm0, %v840_v1 }
  0x79   :  { %619 = vmatprep.mubr.msk.f32.mxu0 %vm839_vm0, %v840_v1  ;;  %646 = vmatpush3.bf16.msra.mxu0 %v645_v27  ;;  %p806_p10 = pnand %p805_p9, %p799_p6 }
  0x7a   :  { %647 = vmatprep.subr.bf16.mxu0 %v838_v0 }
  0x7d   :  { %649 = vmatpush3.bf16.msra.mxu0 %v648_v29 }
  0x80   :  { %620 = vmatmul.mubr.msk.f32.vlgmr.msra.gmra.mrb[2].mxu0 %vm127_vm1, %v286_v30 }
 0x14a   :  { %v282_v18 = vpop.f32.mrb[0].mxu1 }
 0x14b   :  { %v283_v19 = vadd.f32 %v562_v16, %v282_v18  ;;  %v610_v20 = vpop.f32.mrb[1].mxu1  ;;  %v197_v21 = vpop.f32.mrb[0].mxu0 }
 0x14c   :  { %v198_v22 = vadd.f32 %v560_v17, %v197_v21  ;;  %v599_v23 = vpop.f32.mrb[1].mxu0 }
 0x14d   :  { %623 = vmatpush3.xpose.msk.msra.mxu1 %vm127_vm1, %v283_v19 }
 0x14e   :  { %627 = vmatprep.subr.mxu1 %v840_v1 }
 0x150   :  { %625 = vmatmul.mubr.msk.f32.vlgmr.msra.gmra.mrb[2].mxu1 %vm127_vm1, %v198_v22 }
 0x151   :  { %629 = vmatprep.mubr.msk.f32.mxu1 %vm839_vm0, %v840_v1 }
 0x153   :  { %v367_v39 = vpop.f32.mrb[2].mxu0 }
 0x154   :  { %v621_v41 = vpop.f32.mrb[3].mxu0  ;;  %v368_v42 = vadd.f32 %v564_v40, %v367_v39 }
 0x156   :  { %628 = vmatpush3.msra.mxu1 %v368_v42 }
 0x223   :  { %v443_v31 = vpop.f32.mrb[2].mxu1 }
 0x224   :  { %v626_v32 = vpop.f32.mrb[3].mxu1  ;;  %v448_v33 = vsel %vm447_vm2, %v443_v31, -inf }
 0x225   :  { %449 = vmax.xlane.f32.xlu0 %v448_v33 }
 0x2b2   :  { %v450_v34 = vpop.xlane.xlu0 %449 }
 0x2b3   :  { %v451_v35 = vsub.f32 %v443_v31, %v450_v34 }
 0x2b5   :  { %v452_v36 = vmul.f32 1.442695, %v451_v35 }
 0x2b7   :  { %662 = vpow2.f32 %v452_v36 }
 0x2c1   :  { %v663_v37 = vpop.eup %662 }
 0x2c2   :  { %v454_v38 = vsel %vm447_vm2, %v663_v37, 0.0 }
 0x2c3   :  { %455 = vadd.xlane.f32.xlu0 %v454_v38 }
 0x350   :  { %v456_v43 = vpop.xlane.xlu0 %455 }
 0x351   :  { %664 = vrcp.f32 %v456_v43 }
 0x35b   :  { %v665_v44 = vpop.eup %664 }
 0x35c   :  { %v458_v46 = vmul.f32 %v665_v44, %v663_v37 }
 0x35e   :  { %v460_v47 = vmul.f32 %v459_v45, %v458_v46 }
 0x360   :  { %630 = vmatmul.mubr.msk.f32.vlgmr.msra.gmra.mrb[4].mxu1 %vm447_vm2, %v460_v47 }
 0x433   :  { %v537_v49 = vpop.f32.mrb[4].mxu1 }
 0x434   :  { %v538_v50 = vadd.f32 %v568_v48, %v537_v49  ;;  %v631_v51 = vpop.f32.mrb[5].mxu1 }
 0x436   :  { %541 = vst.msk [vmem:[#allocation13] sm:$0xff] %vm127_vm1, %v538_v50 }
 0x437   :  { %809 = shalt.err (!%p806_p10)
}
 0x438   :  { %s810_s19 = scalar_lea.hbm %s1049_s11, 128 }
 0x439   :  { %p811_p11 = scmp.ne.s32.totalorder %s1049_s11, %s810_s19  ;;  %p814_p12 = scmp.lt.u32.totalorder %s810_s19, %s1049_s11 }
 0x43b   :  { %p816_p13 = pnand %p814_p12, %p811_p11 }
 0x43d   :  { %819 = shalt.err (!%p816_p13)
}
 0x43e   :  { %551 = dma.vmem_to_hbm [thread:$0]  %s549_s8, 128, %s1049_s11, [#allocation4]  }
 0x43f   :  { %828 = dma.done.wait [#allocation4], 128  }
 0x440   :  { %829 = vsyncadd [#allocation4], 4294967168 }
 0x441   :  { %555 = vsyncpa [#allocation3], 1 }
 0x442   :  { %556 = vsyncpa [#allocation6], 1 }
 0x443   :  { %557 = vsyncpa [#allocation9], 1 }
 0x444   :  { %558 = vsyncpa [#allocation12], 1 }
 0x445   :  { %559 = vsyncpa [#allocation4], 1 }

</bundles_post_ra>
